<compile_context>
chip_gen: v7x
topology: tpu7x:2x2x1
jax: 0.10.0
libtpu: 0.0.40
codegen_flags: <defaults>
</compile_context>

<pallas_src>
import functools

import jax
import jax.numpy as jnp
from jax import lax
from jax.experimental import pallas as pl
from jax.experimental.pallas import tpu as pltpu


def _discriminator_kernel(x_ref, w1_ref, b1_ref, w2_ref, b2_ref,
                          w3_ref, b3_ref, out_ref, *, activation, mxu_dtype):
    """One batch-tile of the MLP discriminator, fully in VMEM.

    x_ref   : (TB, num_inputs)
    w1_ref  : (num_inputs, h1)    b1_ref : (1, h1)
    w2_ref  : (h1, h2)            b2_ref : (1, h2)
    w3_ref  : (1, h2)   (torch layout: out=1, in=h2)
    b3_ref  : (1,) scalar in SMEM
    out_ref : (1, TB)   lane-dense probabilities for this tile
    """
    if activation == "tanh":
        act = jnp.tanh
    elif activation == "relu":
        act = lambda v: jnp.maximum(v, 0.0)
    elif activation == "sigmoid":
        act = jax.nn.sigmoid
    else:
        raise ValueError(activation)

    # Feed the MXU in mxu_dtype (bf16 by default — native MXU dtype on
    # v5e/v6e/v7x), always accumulating in f32. Activations stay in f32.
    x = x_ref[...].astype(mxu_dtype)

    h = jnp.dot(x, w1_ref[...].astype(mxu_dtype),
                preferred_element_type=jnp.float32) + b1_ref[...]
    h = act(h)

    h = jnp.dot(h.astype(mxu_dtype), w2_ref[...].astype(mxu_dtype),
                preferred_element_type=jnp.float32) + b2_ref[...]
    h = act(h)

    # Logit head: single M=1 MXU row-matmul (1,h2) x (TB,h2)^T -> (1,TB).
    # Result is already lane-dense, so no sublane->lane relayout before the
    # store; the MXU is idle at this point so the extra matmul is ~free.
    logit = lax.dot_general(
        w3_ref[...].astype(mxu_dtype), h.astype(mxu_dtype),
        dimension_numbers=(((1,), (1,)), ((), ())),
        preferred_element_type=jnp.float32) + b3_ref[0]

    out_ref[...] = jax.nn.sigmoid(logit).astype(out_ref.dtype)


def _round_up(v, m):
    return -(-v // m) * m


def _vmem_limit_bytes():
    """Generation-aware VMEM limit: ~half of physical, clamped to [32, 64] MiB.

    v5e/v6e: 128 MiB physical -> 64 MiB (also raises v5e's 16 MiB default
    scoped limit). v7x: 64 MiB per TC -> 32 MiB.
    """
    try:
        physical = int(pltpu.get_tpu_info().vmem_capacity_bytes)
    except Exception:  # no hw query available -> conservative (v7x per-TC)
        physical = 64 << 20
    return int(min(max(physical // 2, 32 << 20), 64 << 20))


def _choose_batch_tile(B, num_inputs, h1, h2, x_itemsize, vmem_budget_bytes):
    """Pick a batch tile that (a) fits the VMEM budget, (b) gives >= 2 grid
    steps for B > 256 (keeps both v7x TensorCores busy), (c) minimises padding
    waste by sizing the tile to round_up(cdiv(B, num_tiles), 128)."""
    # Bytes that scale with the tile: double-buffered x tile, f32 hidden
    # activations, double-buffered (1, TB) f32 output row.
    per_row = 2 * num_inputs * x_itemsize + 4 * (h1 + h2) + 2 * 4
    # Grid-invariant weights/biases, counted double-buffered (worst case).
    weight_bytes = 2 * 4 * (num_inputs * h1 + h1 + h1 * h2 + 2 * h2 + 1)
    avail = max(vmem_budget_bytes - weight_bytes, 512 * 1024)
    cap = min(max((avail // per_row) // 128 * 128, 128), 2048)

    if B <= 256 and B <= cap:
        return B                      # single grid step, zero padding
    num_tiles = max(2 if B > 256 else 1, pl.cdiv(B, cap))
    tile = _round_up(pl.cdiv(B, num_tiles), 128)
    while tile > cap:
        num_tiles += 1
        tile = _round_up(pl.cdiv(B, num_tiles), 128)
    return tile


def discriminator_forward(x, params, *, activation="tanh", batch_tile=None,
                          mxu_dtype=jnp.bfloat16):
    """Run the Pallas discriminator. x: (B, num_inputs). Returns (B, 1) probs."""
    w1, b1, w2, b2, w3, b3 = params
    B, num_inputs = x.shape
    h1 = w1.shape[1]
    h2 = w2.shape[1]

    vmem_limit = _vmem_limit_bytes()
    if batch_tile is None:
        batch_tile = _choose_batch_tile(B, num_inputs, h1, h2,
                                        jnp.dtype(x.dtype).itemsize,
                                        vmem_limit // 2)
    num_tiles = pl.cdiv(B, batch_tile)
    B_cover = num_tiles * batch_tile

    kernel = functools.partial(_discriminator_kernel, activation=activation,
                               mxu_dtype=mxu_dtype)
    invariant = lambda i: (0, 0)  # weights/biases: same block every grid step

    act_transc = {"tanh": h1 + h2, "sigmoid": h1 + h2, "relu": 0}[activation]
    param_bytes = sum(int(p.size) * p.dtype.itemsize
                      for p in (w1, b1, w2, b2, w3, b3))
    cost = pl.CostEstimate(
        flops=2 * B_cover * (num_inputs * h1 + h1 * h2 + h2),
        transcendentals=B_cover * (act_transc + 1),
        bytes_accessed=int(B_cover * num_inputs * x.dtype.itemsize
                           + param_bytes + B_cover * 4),
    )

    def build(weight_pipeline_mode):
        wkw = ({} if weight_pipeline_mode is None
               else {"pipeline_mode": weight_pipeline_mode})
        in_specs = [
            pl.BlockSpec((batch_tile, num_inputs), lambda i: (i, 0)),      # x
            pl.BlockSpec((num_inputs, h1), invariant, **wkw),              # W1
            pl.BlockSpec((1, h1), invariant, **wkw),                       # b1
            pl.BlockSpec((h1, h2), invariant, **wkw),                      # W2
            pl.BlockSpec((1, h2), invariant, **wkw),                       # b2
            pl.BlockSpec((1, h2), invariant, **wkw),                       # W3 row
            pl.BlockSpec(memory_space=pltpu.MemorySpace.SMEM),             # b3
        ]
        return pl.pallas_call(
            kernel,
            out_shape=jax.ShapeDtypeStruct((num_tiles, batch_tile), jnp.float32),
            grid_spec=pltpu.PrefetchScalarGridSpec(
                num_scalar_prefetch=0,
                grid=(num_tiles,),
                in_specs=in_specs,
                # Lane-dense output: one (1, batch_tile) row per grid step.
                out_specs=pl.BlockSpec((1, batch_tile), lambda i: (i, 0)),
            ),
            compiler_params=pltpu.CompilerParams(
                dimension_semantics=("parallel",),   # shards across v7x's 2 TCs
                vmem_limit_bytes=vmem_limit,
            ),
            cost_estimate=cost,
        )

    args = (x, w1, b1, w2, b2, w3, b3)
    try:
        # Grid-invariant weights only need a single VMEM buffer.
        out = jax.block_until_ready(build(pl.Buffered(1))(*args))
    except Exception:
        # Fallback: this jax build rejects pipeline_mode on top-level
        # BlockSpecs — use default double buffering (correctness identical).
        out = build(None)(*args)

    # Rows >= B of the coverage grid correspond to out-of-bounds (garbage)
    # input rows of the ragged last tile; rows are independent, so slicing
    # them off yields exactly the B valid probabilities.
    return out.reshape(B_cover, 1)[:B]


def init_params(key, num_inputs, hidden_size=(128, 128)):
    """Parameter init mimicking torch.nn.Linear defaults.

    Hidden-layer weights are stored pre-transposed as (in, out) so the kernel
    computes x @ W on the MXU.  The head ("logic") weight is kept in torch
    (1, h2) layout for the lane-dense row matmul, scaled by 0.1, bias zeroed —
    matching the PyTorch __init__.
    """
    dims = [num_inputs] + list(hidden_size) + [1]
    params = []
    n_layers = len(dims) - 1
    for layer_idx in range(n_layers):
        fan_in, fan_out = dims[layer_idx], dims[layer_idx + 1]
        key, kw, kb = jax.random.split(key, 3)
        bound = float(fan_in) ** -0.5
        w = jax.random.uniform(kw, (fan_in, fan_out), jnp.float32, -bound, bound)
        b = jax.random.uniform(kb, (fan_out,), jnp.float32, -bound, bound)
        if layer_idx == n_layers - 1:                  # logic head
            w3 = (w * 0.1).T                           # (1, h2)
            b3 = b * 0.0                               # (1,)
            params.extend([w3, b3])
        else:
            params.extend([w, b.reshape(1, fan_out)])
    return tuple(params)


def _reference_forward(x, params, activation="tanh"):
    w1, b1, w2, b2, w3, b3 = params
    act = {"tanh": jnp.tanh,
           "relu": lambda v: jnp.maximum(v, 0.0),
           "sigmoid": jax.nn.sigmoid}[activation]
    h = act(x @ w1 + b1)
    h = act(h @ w2 + b2)
    return jax.nn.sigmoid(h @ w3.T + b3)


if __name__ == "__main__":
    key = jax.random.PRNGKey(0)
    k_x, k_p, k_x2 = jax.random.split(key, 3)

    # Small config consistent with the module: batch=8, num_inputs=32, hidden=(32, 32)
    B, num_inputs = 8, 32
    hidden_size = (32, 32)

    x = jax.random.normal(k_x, (B, num_inputs), jnp.float32)
    params = init_params(k_p, num_inputs, hidden_size)

    # Exact-precision path (f32 MXU feed): tight check vs reference.
    prob = jax.block_until_ready(
        discriminator_forward(x, params, activation="tanh",
                              mxu_dtype=jnp.float32))
    ref = _reference_forward(x, params, activation="tanh")
    assert prob.shape == (B, 1)
    assert jnp.allclose(prob, ref, atol=1e-5, rtol=1e-5), "mismatch vs reference (f32)"

    # Default bf16-fed MXU path; multi-tile grid with a ragged last tile
    # (B2=300 -> 2 tiles of 256, lane-dense outputs, no wrapper padding copy).
    B2 = 300
    x2 = jax.random.normal(k_x2, (B2, num_inputs), jnp.float32)
    prob2 = jax.block_until_ready(
        discriminator_forward(x2, params, activation="tanh"))
    ref2 = _reference_forward(x2, params, activation="tanh")
    assert prob2.shape == (B2, 1)
    assert jnp.allclose(prob2, ref2, atol=2e-2, rtol=0), "mismatch vs reference (bf16, tiled)"
    assert bool(jnp.all(jnp.isfinite(prob2)))

    print("KERNEL_OK")
</pallas_src>

<mosaic_0001>
module attributes {stable_mosaic.version = 11 : i64} {
  func.func @_discriminator_kernel(%arg0: i32, %arg1: memref<8x32xf32, #tpu.memory_space<vmem>>, %arg2: memref<32x32xf32, #tpu.memory_space<vmem>>, %arg3: memref<1x32xf32, #tpu.memory_space<vmem>>, %arg4: memref<32x32xf32, #tpu.memory_space<vmem>>, %arg5: memref<1x32xf32, #tpu.memory_space<vmem>>, %arg6: memref<1x32xf32, #tpu.memory_space<vmem>>, %arg7: memref<1xf32, #tpu.memory_space<smem>>, %arg8: memref<1x8xf32, #tpu.memory_space<vmem>>) attributes {dimension_semantics = [#tpu.dimension_semantics<parallel>], iteration_bounds = array<i64: 1>, scalar_prefetch = 0 : i64, scratch_operands = 0 : i64, tpu.core_type = #tpu.core_type<tc>, window_params = [{transform_indices = @transform_0, window_bounds = array<i64: 8, 32>}, {pipeline_mode = #tpu.pipeline_mode<synchronous>, transform_indices = @transform_1, window_bounds = array<i64: 32, 32>}, {pipeline_mode = #tpu.pipeline_mode<synchronous>, transform_indices = @transform_2, window_bounds = array<i64: 1, 32>}, {pipeline_mode = #tpu.pipeline_mode<synchronous>, transform_indices = @transform_3, window_bounds = array<i64: 32, 32>}, {pipeline_mode = #tpu.pipeline_mode<synchronous>, transform_indices = @transform_4, window_bounds = array<i64: 1, 32>}, {pipeline_mode = #tpu.pipeline_mode<synchronous>, transform_indices = @transform_5, window_bounds = array<i64: 1, 32>}, {transform_indices = @transform_6, window_bounds = array<i64: 1>}, {transform_indices = @transform_7, window_bounds = array<i64: 1, 8>}]} {
    %c0 = arith.constant 0 : index
    %c0_0 = arith.constant 0 : index
    %0 = vector.load %arg1[%c0, %c0_0] : memref<8x32xf32, #tpu.memory_space<vmem>>, vector<8x32xf32>
    %c0_1 = arith.constant 0 : index
    %c0_2 = arith.constant 0 : index
    %1 = vector.load %arg2[%c0_1, %c0_2] : memref<32x32xf32, #tpu.memory_space<vmem>>, vector<32x32xf32>
    %cst = arith.constant dense<0.000000e+00> : vector<8x32xf32>
    %2 = tpu.matmul %0, %1, %cst {dimension_numbers = #tpu.dot_dimension_numbers<[1], [0], [0], [1], [0, 0, 1, 1], [], []>} : vector<8x32xf32>, vector<32x32xf32>, vector<8x32xf32> -> vector<8x32xf32>
    %c0_3 = arith.constant 0 : index
    %c0_4 = arith.constant 0 : index
    %3 = vector.load %arg3[%c0_3, %c0_4] : memref<1x32xf32, #tpu.memory_space<vmem>>, vector<1x32xf32>
    %4 = vector.broadcast %3 : vector<1x32xf32> to vector<8x32xf32>
    %5 = arith.addf %2, %4 : vector<8x32xf32>
    %6 = math.tanh %5 : vector<8x32xf32>
    %c0_5 = arith.constant 0 : index
    %c0_6 = arith.constant 0 : index
    %7 = vector.load %arg4[%c0_5, %c0_6] : memref<32x32xf32, #tpu.memory_space<vmem>>, vector<32x32xf32>
    %cst_7 = arith.constant dense<0.000000e+00> : vector<8x32xf32>
    %8 = tpu.matmul %6, %7, %cst_7 {dimension_numbers = #tpu.dot_dimension_numbers<[1], [0], [0], [1], [0, 0, 1, 1], [], []>} : vector<8x32xf32>, vector<32x32xf32>, vector<8x32xf32> -> vector<8x32xf32>
    %c0_8 = arith.constant 0 : index
    %c0_9 = arith.constant 0 : index
    %9 = vector.load %arg5[%c0_8, %c0_9] : memref<1x32xf32, #tpu.memory_space<vmem>>, vector<1x32xf32>
    %10 = vector.broadcast %9 : vector<1x32xf32> to vector<8x32xf32>
    %11 = arith.addf %8, %10 : vector<8x32xf32>
    %12 = math.tanh %11 : vector<8x32xf32>
    %c0_10 = arith.constant 0 : index
    %c0_11 = arith.constant 0 : index
    %13 = vector.load %arg6[%c0_10, %c0_11] : memref<1x32xf32, #tpu.memory_space<vmem>>, vector<1x32xf32>
    %cst_12 = arith.constant dense<0.000000e+00> : vector<1x8xf32>
    %14 = tpu.matmul %13, %12, %cst_12 {dimension_numbers = #tpu.dot_dimension_numbers<[1], [1], [0], [0], [0, 0, 1, 0], [], []>} : vector<1x32xf32>, vector<8x32xf32>, vector<1x8xf32> -> vector<1x8xf32>
    %c0_13 = arith.constant 0 : index
    %15 = memref.load %arg7[%c0_13] : memref<1xf32, #tpu.memory_space<smem>>
    %16 = vector.broadcast %15 : f32 to vector<1x8xf32>
    %17 = arith.addf %14, %16 : vector<1x8xf32>
    %18 = arith.negf %17 : vector<1x8xf32>
    %19 = math.exp %18 : vector<1x8xf32>
    %cst_14 = arith.constant 1.000000e+00 : f32
    %20 = vector.broadcast %cst_14 : f32 to vector<1x8xf32>
    %21 = arith.addf %20, %19 : vector<1x8xf32>
    %22 = arith.divf %20, %21 : vector<1x8xf32>
    %c0_15 = arith.constant 0 : index
    %c0_16 = arith.constant 0 : index
    %23 = vector.load %arg8[%c0_15, %c0_16] : memref<1x8xf32, #tpu.memory_space<vmem>>, vector<1x8xf32>
    tpu.vector_store %arg8[%c0_15, %c0_16], %22 {strides = array<i32>} : memref<1x8xf32, #tpu.memory_space<vmem>>, vector<1x8xf32>,
    return
  }
  func.func @transform_0(%arg0: i32) -> (i32, i32) {
    %c0_i32 = arith.constant 0 : i32
    %c0_i32_0 = arith.constant 0 : i32
    return %arg0, %c0_i32 : i32, i32
  }
  func.func @transform_1(%arg0: i32) -> (i32, i32) {
    %c0_i32 = arith.constant 0 : i32
    %c0_i32_0 = arith.constant 0 : i32
    %c0_i32_1 = arith.constant 0 : i32
    return %c0_i32, %c0_i32_0 : i32, i32
  }
  func.func @transform_2(%arg0: i32) -> (i32, i32) {
    %c0_i32 = arith.constant 0 : i32
    %c0_i32_0 = arith.constant 0 : i32
    %c0_i32_1 = arith.constant 0 : i32
    return %c0_i32, %c0_i32_0 : i32, i32
  }
  func.func @transform_3(%arg0: i32) -> (i32, i32) {
    %c0_i32 = arith.constant 0 : i32
    %c0_i32_0 = arith.constant 0 : i32
    %c0_i32_1 = arith.constant 0 : i32
    return %c0_i32, %c0_i32_0 : i32, i32
  }
  func.func @transform_4(%arg0: i32) -> (i32, i32) {
    %c0_i32 = arith.constant 0 : i32
    %c0_i32_0 = arith.constant 0 : i32
    %c0_i32_1 = arith.constant 0 : i32
    return %c0_i32, %c0_i32_0 : i32, i32
  }
  func.func @transform_5(%arg0: i32) -> (i32, i32) {
    %c0_i32 = arith.constant 0 : i32
    %c0_i32_0 = arith.constant 0 : i32
    %c0_i32_1 = arith.constant 0 : i32
    return %c0_i32, %c0_i32_0 : i32, i32
  }
  func.func @transform_6(%arg0: i32) -> i32 {
    %c0_i32 = arith.constant 0 : i32
    %c0_i32_0 = arith.constant 0 : i32
    return %c0_i32 : i32
  }
  func.func @transform_7(%arg0: i32) -> (i32, i32) {
    %c0_i32 = arith.constant 0 : i32
    %c0_i32_0 = arith.constant 0 : i32
    return %arg0, %c0_i32 : i32, i32
  }
}

module attributes {stable_mosaic.version = 11 : i64} {
  func.func @_discriminator_kernel(%arg0: i32, %arg1: memref<8x32xf32, #tpu.memory_space<vmem>>, %arg2: memref<32x32xf32, #tpu.memory_space<vmem>>, %arg3: memref<1x32xf32, #tpu.memory_space<vmem>>, %arg4: memref<32x32xf32, #tpu.memory_space<vmem>>, %arg5: memref<1x32xf32, #tpu.memory_space<vmem>>, %arg6: memref<1x32xf32, #tpu.memory_space<vmem>>, %arg7: memref<1xf32, #tpu.memory_space<smem>>, %arg8: memref<1x8xf32, #tpu.memory_space<vmem>>) attributes {dimension_semantics = [#tpu.dimension_semantics<parallel>], iteration_bounds = array<i64: 1>, scalar_prefetch = 0 : i64, scratch_operands = 0 : i64, tpu.core_type = #tpu.core_type<tc>, window_params = [{transform_indices = @transform_0, window_bounds = array<i64: 8, 32>}, {pipeline_mode = #tpu.pipeline_mode<synchronous>, transform_indices = @transform_1, window_bounds = array<i64: 32, 32>}, {pipeline_mode = #tpu.pipeline_mode<synchronous>, transform_indices = @transform_2, window_bounds = array<i64: 1, 32>}, {pipeline_mode = #tpu.pipeline_mode<synchronous>, transform_indices = @transform_3, window_bounds = array<i64: 32, 32>}, {pipeline_mode = #tpu.pipeline_mode<synchronous>, transform_indices = @transform_4, window_bounds = array<i64: 1, 32>}, {pipeline_mode = #tpu.pipeline_mode<synchronous>, transform_indices = @transform_5, window_bounds = array<i64: 1, 32>}, {transform_indices = @transform_6, window_bounds = array<i64: 1>}, {transform_indices = @transform_7, window_bounds = array<i64: 1, 8>}]} {
    %c0 = arith.constant 0 : index
    %c0_0 = arith.constant 0 : index
    %0 = vector.load %arg1[%c0, %c0_0] : memref<8x32xf32, #tpu.memory_space<vmem>>, vector<8x32xf32>
    %c0_1 = arith.constant 0 : index
    %c0_2 = arith.constant 0 : index
    %1 = vector.load %arg2[%c0_1, %c0_2] : memref<32x32xf32, #tpu.memory_space<vmem>>, vector<32x32xf32>
    %cst = arith.constant dense<0.000000e+00> : vector<8x32xf32>
    %2 = tpu.matmul %0, %1, %cst {dimension_numbers = #tpu.dot_dimension_numbers<[1], [0], [0], [1], [0, 0, 1, 1], [], []>} : vector<8x32xf32>, vector<32x32xf32>, vector<8x32xf32> -> vector<8x32xf32>
    %c0_3 = arith.constant 0 : index
    %c0_4 = arith.constant 0 : index
    %3 = vector.load %arg3[%c0_3, %c0_4] : memref<1x32xf32, #tpu.memory_space<vmem>>, vector<1x32xf32>
    %4 = vector.broadcast %3 : vector<1x32xf32> to vector<8x32xf32>
    %5 = arith.addf %2, %4 : vector<8x32xf32>
    %6 = math.tanh %5 : vector<8x32xf32>
    %c0_5 = arith.constant 0 : index
    %c0_6 = arith.constant 0 : index
    %7 = vector.load %arg4[%c0_5, %c0_6] : memref<32x32xf32, #tpu.memory_space<vmem>>, vector<32x32xf32>
    %cst_7 = arith.constant dense<0.000000e+00> : vector<8x32xf32>
    %8 = tpu.matmul %6, %7, %cst_7 {dimension_numbers = #tpu.dot_dimension_numbers<[1], [0], [0], [1], [0, 0, 1, 1], [], []>} : vector<8x32xf32>, vector<32x32xf32>, vector<8x32xf32> -> vector<8x32xf32>
    %c0_8 = arith.constant 0 : index
    %c0_9 = arith.constant 0 : index
    %9 = vector.load %arg5[%c0_8, %c0_9] : memref<1x32xf32, #tpu.memory_space<vmem>>, vector<1x32xf32>
    %10 = vector.broadcast %9 : vector<1x32xf32> to vector<8x32xf32>
    %11 = arith.addf %8, %10 : vector<8x32xf32>
    %12 = math.tanh %11 : vector<8x32xf32>
    %c0_10 = arith.constant 0 : index
    %c0_11 = arith.constant 0 : index
    %13 = vector.load %arg6[%c0_10, %c0_11] : memref<1x32xf32, #tpu.memory_space<vmem>>, vector<1x32xf32>
    %cst_12 = arith.constant dense<0.000000e+00> : vector<1x8xf32>
    %14 = tpu.matmul %13, %12, %cst_12 {dimension_numbers = #tpu.dot_dimension_numbers<[1], [1], [0], [0], [0, 0, 1, 0], [], []>} : vector<1x32xf32>, vector<8x32xf32>, vector<1x8xf32> -> vector<1x8xf32>
    %c0_13 = arith.constant 0 : index
    %15 = memref.load %arg7[%c0_13] : memref<1xf32, #tpu.memory_space<smem>>
    %16 = vector.broadcast %15 : f32 to vector<1x8xf32>
    %17 = arith.addf %14, %16 : vector<1x8xf32>
    %18 = arith.negf %17 : vector<1x8xf32>
    %19 = math.exp %18 : vector<1x8xf32>
    %cst_14 = arith.constant 1.000000e+00 : f32
    %20 = vector.broadcast %cst_14 : f32 to vector<1x8xf32>
    %21 = arith.addf %20, %19 : vector<1x8xf32>
    %22 = arith.divf %20, %21 : vector<1x8xf32>
    %c0_15 = arith.constant 0 : index
    %c0_16 = arith.constant 0 : index
    %23 = vector.load %arg8[%c0_15, %c0_16] : memref<1x8xf32, #tpu.memory_space<vmem>>, vector<1x8xf32>
    tpu.vector_store %arg8[%c0_15, %c0_16], %22 {strides = array<i32>} : memref<1x8xf32, #tpu.memory_space<vmem>>, vector<1x8xf32>,
    return
  }
  func.func @transform_0(%arg0: i32) -> (i32, i32) {
    %c0_i32 = arith.constant 0 : i32
    %c0_i32_0 = arith.constant 0 : i32
    return %arg0, %c0_i32 : i32, i32
  }
  func.func @transform_1(%arg0: i32) -> (i32, i32) {
    %c0_i32 = arith.constant 0 : i32
    %c0_i32_0 = arith.constant 0 : i32
    %c0_i32_1 = arith.constant 0 : i32
    return %c0_i32, %c0_i32_0 : i32, i32
  }
  func.func @transform_2(%arg0: i32) -> (i32, i32) {
    %c0_i32 = arith.constant 0 : i32
    %c0_i32_0 = arith.constant 0 : i32
    %c0_i32_1 = arith.constant 0 : i32
    return %c0_i32, %c0_i32_0 : i32, i32
  }
  func.func @transform_3(%arg0: i32) -> (i32, i32) {
    %c0_i32 = arith.constant 0 : i32
    %c0_i32_0 = arith.constant 0 : i32
    %c0_i32_1 = arith.constant 0 : i32
    return %c0_i32, %c0_i32_0 : i32, i32
  }
  func.func @transform_4(%arg0: i32) -> (i32, i32) {
    %c0_i32 = arith.constant 0 : i32
    %c0_i32_0 = arith.constant 0 : i32
    %c0_i32_1 = arith.constant 0 : i32
    return %c0_i32, %c0_i32_0 : i32, i32
  }
  func.func @transform_5(%arg0: i32) -> (i32, i32) {
    %c0_i32 = arith.constant 0 : i32
    %c0_i32_0 = arith.constant 0 : i32
    %c0_i32_1 = arith.constant 0 : i32
    return %c0_i32, %c0_i32_0 : i32, i32
  }
  func.func @transform_6(%arg0: i32) -> i32 {
    %c0_i32 = arith.constant 0 : i32
    %c0_i32_0 = arith.constant 0 : i32
    return %c0_i32 : i32
  }
  func.func @transform_7(%arg0: i32) -> (i32, i32) {
    %c0_i32 = arith.constant 0 : i32
    %c0_i32_0 = arith.constant 0 : i32
    return %arg0, %c0_i32 : i32, i32
  }
}

</mosaic_0001>

<bundles_post_ra>
// kernel: tpu_custom_call.1
= control target key start
LH: loop header
LB: loop body
LE: loop exit
PB: predicated region body
PF: predicated region fallthrough
CT: control target
= control target key end

     0   :  { %13 = vsyncpa [#allocation4], 0  ;;  %s633_s0 = inlined_call_operand.hbm [shape: f32[8,32], index: 0, kind: input, shape index: {}]   ;;  %s634_s1 = inlined_call_operand.hbm [shape: f32[32,32], index: 1, kind: input, shape index: {}]   ;;  %s635_s2 = inlined_call_operand.vmem [shape: f32[1,32], index: 2, kind: input, shape index: {}]   ;;  %s636_s3 = inlined_call_operand.hbm [shape: f32[32,32], index: 3, kind: input, shape index: {}]   ;;  %s637_s4 = inlined_call_operand.vmem [shape: f32[1,32], index: 4, kind: input, shape index: {}]   ;;  %s638_s5 = inlined_call_operand.vmem [shape: f32[1,32], index: 5, kind: input, shape index: {}]   ;;  %s639_s6 = inlined_call_operand.<no memory space> [shape: f32[1], index: 6, kind: input, shape index: {}]   ;;  %s640_s7 = inlined_call_operand.hbm [shape: f32[1,8], index: 7, kind: output, shape index: {}]  }
   0x1   :  { %14 = vsyncpa [#allocation7], 0 }
   0x2   :  { %15 = vsyncpa [#allocation5], 0  ;;  %s511_s24 = smov [#allocation6]   ;;  %s417_s28 = scalar_lea.hbm %s634_s1, 512 }
   0x3   :  { %s31_s25 = sshll.u32 %s511_s24, 4  ;;  %p418_p0 = scmp.ne.s32.totalorder %s634_s1, %s417_s28  ;;  %s32_s25 = int_to_ptr.vmem [resolvable:$true] %s31_s25 }
   0x4   :  { %p421_p1 = scmp.lt.u32.totalorder %s417_s28, %s634_s1 }
   0x6   :  { %p423_p2 = pnand %p421_p1, %p418_p0 }
   0x8   :  { %426 = shalt.err (!%p423_p2)
}
   0x9   :  { %s427_s10 = scalar_lea.vmem %s32_s25, 512  ;;  %p432_p4 = scmp.lt.s32.totalorder %s32_s25, %s32_s25 }
   0xa   :  { %p428_p3 = scmp.ne.s32.totalorder %s32_s25, %s427_s10  ;;  %p433_p5 = scmp.lt.s32.totalorder %s427_s10, %s427_s10 }
   0xc   :  { %p434_p6 = por %p433_p5, %p432_p4 }
   0xe   :  { %p435_p7 = pnand %p434_p6, %p428_p3 }
  0x10   :  { %438 = shalt.err (!%p435_p7)
}
  0x11   :  { %s512_s11 = smov 128   ;;  %s513_s12 = smov 8  }
  0x12   :  { %37 = dma.hbm_to_vmem [thread:$0]  %s634_s1, 512, %s32_s25, [#allocation7], %s512_s11, %s512_s11, %s513_s12  }
  0x13   :  { %s514_s15 = smov [#allocation3]   ;;  %s515_s17 = smov [#allocation8]  }
  0x14   :  { %s22_s16 = sshll.u32 %s514_s15, 4  ;;  %s45_s18 = sshll.u32 %s515_s17, 4  ;;  %s23_s16 = int_to_ptr.vmem [resolvable:$true] %s22_s16  ;;  %s46_s18 = int_to_ptr.vmem [resolvable:$true] %s45_s18 }
  0x15   :  { %s439_s21 = scalar_lea.hbm %s633_s0, 128 }
  0x16   :  { %p440_p8 = scmp.ne.s32.totalorder %s633_s0, %s439_s21  ;;  %p443_p9 = scmp.lt.u32.totalorder %s439_s21, %s633_s0 }
  0x18   :  { %p445_p10 = pnand %p443_p9, %p440_p8 }
  0x1a   :  { %448 = shalt.err (!%p445_p10)
}
  0x1b   :  { %s449_s1 = scalar_lea.vmem %s23_s16, 128  ;;  %p454_p12 = scmp.lt.s32.totalorder %s23_s16, %s23_s16 }
  0x1c   :  { %p450_p11 = scmp.ne.s32.totalorder %s23_s16, %s449_s1  ;;  %p455_p13 = scmp.lt.s32.totalorder %s449_s1, %s449_s1 }
  0x1e   :  { %p456_p0 = por %p455_p13, %p454_p12 }
  0x20   :  { %p457_p1 = pnand %p456_p0, %p450_p11 }
  0x22   :  { %460 = shalt.err (!%p457_p1)
}
  0x23   :  { %25 = dma.hbm_to_vmem [thread:$0]  %s633_s0, 128, %s23_s16, [#allocation4]  }
  0x24   :  { %s461_s30 = scalar_lea.hbm %s636_s3, 512 }
  0x25   :  { %p462_p2 = scmp.ne.s32.totalorder %s636_s3, %s461_s30  ;;  %p465_p3 = scmp.lt.u32.totalorder %s461_s30, %s636_s3 }
  0x27   :  { %p467_p4 = pnand %p465_p3, %p462_p2 }
  0x29   :  { %470 = shalt.err (!%p467_p4)
}
  0x2a   :  { %s471_s14 = scalar_lea.vmem %s46_s18, 512  ;;  %p476_p6 = scmp.lt.s32.totalorder %s46_s18, %s46_s18 }
  0x2b   :  { %p472_p5 = scmp.ne.s32.totalorder %s46_s18, %s471_s14  ;;  %p477_p7 = scmp.lt.s32.totalorder %s471_s14, %s471_s14 }
  0x2d   :  { %p478_p8 = por %p477_p7, %p476_p6 }
  0x2f   :  { %p479_p9 = pnand %p478_p8, %p472_p5 }
  0x31   :  { %482 = shalt.err (!%p479_p9)
}
  0x32   :  { %51 = dma.hbm_to_vmem [thread:$0]  %s636_s3, 512, %s46_s18, [#allocation7], %s512_s11, %s512_s11, %s513_s12  }
  0x33   :  { %505 = dma.done.wait [#allocation4], 128  }
  0x34   :  { %506 = vsyncadd [#allocation4], 4294967168 }
  0x35   :  { %507 = dma.done.wait [#allocation7], 1024  }
  0x36   :  { %508 = vsyncadd [#allocation7], 4294966272  ;;  %v516_v0 = vmov 0.0|0.0   ;;  %vm517_vm0 = vmmov 0   ;;  %v518_v1 = vmov 0.0   ;;  %v68_v2 = vld [vmem:[#allocation6] sm:$0xff]  ;;  %v241_v26 = vstv %s639_s6 }
  0x37   :  { %388 = vmatprep.subr.bf16.mxu0 %v516_v0  ;;  %369 = vmatprep.mubr.msk.f32.mxu0 %vm517_vm0, %v518_v1  ;;  %v69_v3 = vld [vmem:[#allocation6 + $0x8] sm:$0xff]  ;;  %v70_v4 = vld [vmem:[#allocation6 + $0x10] sm:$0xff]  ;;  %v71_v6 = vld [vmem:[#allocation6 + $0x18] sm:$0xff]  ;;  %vm79_vm1 = vcmask 261120   ;;  %vm324_vm2 = vcmask 57344  }
  0x38   :  { %394 = vmatprep.subr.bf16.mxu1 %v516_v0  ;;  %380 = vmatprep.mubr.msk.f32.mxu1 %vm517_vm0, %v518_v1  ;;  %v389_v5 = vpack.c.bf16 %v69_v3, %v68_v2  ;;  %v392_v7 = vpack.c.bf16 %v71_v6, %v70_v4  ;;  %v67_v8 = vld [vmem:[#allocation3] sm:$0xff]  ;;  %v154_v9 = vld [vmem:[#allocation8] sm:$0xff]  ;;  %v155_v10 = vld [vmem:[#allocation8 + $0x8] sm:$0xff] }
  0x39   :  { %v156_v11 = vld [vmem:[#allocation8 + $0x10] sm:$0xff]  ;;  %v395_v12 = vpack.c.bf16 %v155_v10, %v154_v9  ;;  %v157_v13 = vld [vmem:[#allocation8 + $0x18] sm:$0xff] }
  0x3a   :  { %390 = vmatpush3.bf16.msra.mxu0 %v389_v5  ;;  %v398_v14 = vpack.c.bf16 %v157_v13, %v156_v11  ;;  %v342_v15 = vld [vmem:[%s635_s2] ss:$0 sm:$0xff] }
  0x3b   :  { %391 = vmatprep.subr.bf16.mxu0 %v516_v0  ;;  %396 = vmatpush3.bf16.msra.mxu1 %v395_v12  ;;  %v344_v20 = vld [vmem:[%s637_s4] ss:$0 sm:$0xff]  ;;  %s519_s4 = smov [#allocation9]  }
  0x3c   :  { %397 = vmatprep.subr.bf16.mxu1 %v516_v0  ;;  %v239_v25 = vld [vmem:[%s638_s5] sm:$0x1]  ;;  %s332_s20 = sshll.u32 %s519_s4, 4  ;;  %s333_s20 = int_to_ptr.vmem [resolvable:$true] %s332_s20 }
  0x3d   :  { %s483_s5 = scalar_lea.vmem %s333_s20, 16  ;;  %s487_s21 = scalar_lea.vmem %s333_s20, 32 }
  0x3e   :  { %393 = vmatpush3.bf16.msra.mxu0 %v392_v7  ;;  %p484_p10 = scmp.ne.s32.totalorder %s333_s20, %s483_s5  ;;  %p488_p11 = scmp.lt.s32.totalorder %s333_s20, %s333_s20 }
  0x3f   :  { %383 = vmatprep.subr.mxu0 %v518_v1  ;;  %399 = vmatpush3.bf16.msra.mxu1 %v398_v14  ;;  %p489_p12 = scmp.lt.s32.totalorder %s487_s21, %s483_s5 }
  0x41   :  { %370 = vmatmul.mubr.msk.f32.vlgmr.msra.gmra.mrb[0].mxu0 %vm79_vm1, %v67_v8  ;;  %p490_p13 = por %p489_p12, %p488_p11 }
  0x42   :  { %385 = vmatprep.mubr.msk.f32.mxu0 %vm517_vm0, %v518_v1 }
  0x43   :  { %p491_p0 = pnand %p490_p13, %p484_p10 }
 0x114   :  { %v149_v16 = vpop.f32.mrb[0].mxu0 }
 0x115   :  { %v150_v17 = vadd.f32 %v342_v15, %v149_v16  ;;  %v371_v18 = vpop.f32.mrb[1].mxu0 }
 0x117   :  { %409 = vtanh.f32 %v150_v17 }
 0x121   :  { %v410_v19 = vpop.eup %409 }
 0x122   :  { %381 = vmatmul.mubr.msk.f32.vlgmr.msra.gmra.mrb[0].mxu1 %vm79_vm1, %v410_v19 }
 0x1f5   :  { %v234_v21 = vpop.f32.mrb[0].mxu1 }
 0x1f6   :  { %v235_v22 = vadd.f32 %v344_v20, %v234_v21  ;;  %v382_v23 = vpop.f32.mrb[1].mxu1 }
 0x1f8   :  { %411 = vtanh.f32 %v235_v22 }
 0x202   :  { %v412_v24 = vpop.eup %411 }
 0x203   :  { %384 = vmatpush3.xpose.msk.msra.mxu0 %vm79_vm1, %v412_v24 }
 0x206   :  { %386 = vmatmul.mubr.msk.f32.vlgmr.msra.gmra.mrb[2].mxu0 %vm79_vm1, %v239_v25 }
 0x2d9   :  { %v314_v27 = vpop.f32.mrb[2].mxu0 }
 0x2da   :  { %v315_v28 = vadd.f32 %v314_v27, %v241_v26  ;;  %v387_v29 = vpop.f32.mrb[3].mxu0 }
 0x2dc   :  { %v348_v30 = vmul.f32 -1.442695, %v315_v28 }
 0x2de   :  { %413 = vpow2.f32 %v348_v30 }
 0x2e8   :  { %v414_v31 = vpop.eup %413 }
 0x2e9   :  { %v321_v32 = vadd.f32 1.0, %v414_v31 }
 0x2eb   :  { %415 = vrcp.f32 %v321_v32 }
 0x2f5   :  { %v416_v33 = vpop.eup %415 }
 0x2f6   :  { %325 = vst.msk [vmem:[#allocation9] sm:$0x1] %vm324_vm2, %v416_v33 }
 0x2f7   :  { %494 = shalt.err (!%p491_p0)
}
 0x2f8   :  { %s495_s23 = scalar_lea.hbm %s640_s7, 16 }
 0x2f9   :  { %p496_p1 = scmp.ne.s32.totalorder %s640_s7, %s495_s23  ;;  %p499_p2 = scmp.lt.u32.totalorder %s495_s23, %s640_s7 }
 0x2fb   :  { %p501_p3 = pnand %p499_p2, %p496_p1 }
 0x2fd   :  { %504 = shalt.err (!%p501_p3)
}
 0x2fe   :  { %335 = dma.vmem_to_hbm [thread:$0]  %s333_s20, 16, %s640_s7, [#allocation5]  }
 0x2ff   :  { %509 = dma.done.wait [#allocation5], 16  }
 0x300   :  { %510 = vsyncadd [#allocation5], 4294967280 }
 0x301   :  { %339 = vsyncpa [#allocation4], 1 }
 0x302   :  { %340 = vsyncpa [#allocation7], 1 }
 0x303   :  { %341 = vsyncpa [#allocation5], 1 }

// kernel: tpu_custom_call.1
= control target key start
LH: loop header
LB: loop body
LE: loop exit
PB: predicated region body
PF: predicated region fallthrough
CT: control target
= control target key end

     0   :  { %13 = vsyncpa [#allocation4], 0  ;;  %s633_s0 = inlined_call_operand.hbm [shape: f32[8,32], index: 0, kind: input, shape index: {}]   ;;  %s634_s1 = inlined_call_operand.hbm [shape: f32[32,32], index: 1, kind: input, shape index: {}]   ;;  %s635_s2 = inlined_call_operand.vmem [shape: f32[1,32], index: 2, kind: input, shape index: {}]   ;;  %s636_s3 = inlined_call_operand.hbm [shape: f32[32,32], index: 3, kind: input, shape index: {}]   ;;  %s637_s4 = inlined_call_operand.vmem [shape: f32[1,32], index: 4, kind: input, shape index: {}]   ;;  %s638_s5 = inlined_call_operand.vmem [shape: f32[1,32], index: 5, kind: input, shape index: {}]   ;;  %s639_s6 = inlined_call_operand.<no memory space> [shape: f32[1], index: 6, kind: input, shape index: {}]   ;;  %s640_s7 = inlined_call_operand.hbm [shape: f32[1,8], index: 7, kind: output, shape index: {}]  }
   0x1   :  { %14 = vsyncpa [#allocation7], 0 }
   0x2   :  { %15 = vsyncpa [#allocation5], 0  ;;  %s511_s24 = smov [#allocation6]   ;;  %s417_s28 = scalar_lea.hbm %s634_s1, 512 }
   0x3   :  { %s31_s25 = sshll.u32 %s511_s24, 4  ;;  %p418_p0 = scmp.ne.s32.totalorder %s634_s1, %s417_s28  ;;  %s32_s25 = int_to_ptr.vmem [resolvable:$true] %s31_s25 }
   0x4   :  { %p421_p1 = scmp.lt.u32.totalorder %s417_s28, %s634_s1 }
   0x6   :  { %p423_p2 = pnand %p421_p1, %p418_p0 }
   0x8   :  { %426 = shalt.err (!%p423_p2)
}
   0x9   :  { %s427_s10 = scalar_lea.vmem %s32_s25, 512  ;;  %p432_p4 = scmp.lt.s32.totalorder %s32_s25, %s32_s25 }
   0xa   :  { %p428_p3 = scmp.ne.s32.totalorder %s32_s25, %s427_s10  ;;  %p433_p5 = scmp.lt.s32.totalorder %s427_s10, %s427_s10 }
   0xc   :  { %p434_p6 = por %p433_p5, %p432_p4 }
   0xe   :  { %p435_p7 = pnand %p434_p6, %p428_p3 }
  0x10   :  { %438 = shalt.err (!%p435_p7)
}
  0x11   :  { %s512_s11 = smov 128   ;;  %s513_s12 = smov 8  }
  0x12   :  { %37 = dma.hbm_to_vmem [thread:$0]  %s634_s1, 512, %s32_s25, [#allocation7], %s512_s11, %s512_s11, %s513_s12  }
  0x13   :  { %s514_s15 = smov [#allocation3]   ;;  %s515_s17 = smov [#allocation8]  }
  0x14   :  { %s22_s16 = sshll.u32 %s514_s15, 4  ;;  %s45_s18 = sshll.u32 %s515_s17, 4  ;;  %s23_s16 = int_to_ptr.vmem [resolvable:$true] %s22_s16  ;;  %s46_s18 = int_to_ptr.vmem [resolvable:$true] %s45_s18 }
  0x15   :  { %s439_s21 = scalar_lea.hbm %s633_s0, 128 }
  0x16   :  { %p440_p8 = scmp.ne.s32.totalorder %s633_s0, %s439_s21  ;;  %p443_p9 = scmp.lt.u32.totalorder %s439_s21, %s633_s0 }
  0x18   :  { %p445_p10 = pnand %p443_p9, %p440_p8 }
  0x1a   :  { %448 = shalt.err (!%p445_p10)
}
  0x1b   :  { %s449_s1 = scalar_lea.vmem %s23_s16, 128  ;;  %p454_p12 = scmp.lt.s32.totalorder %s23_s16, %s23_s16 }
  0x1c   :  { %p450_p11 = scmp.ne.s32.totalorder %s23_s16, %s449_s1  ;;  %p455_p13 = scmp.lt.s32.totalorder %s449_s1, %s449_s1 }
  0x1e   :  { %p456_p0 = por %p455_p13, %p454_p12 }
  0x20   :  { %p457_p1 = pnand %p456_p0, %p450_p11 }
  0x22   :  { %460 = shalt.err (!%p457_p1)
}
  0x23   :  { %25 = dma.hbm_to_vmem [thread:$0]  %s633_s0, 128, %s23_s16, [#allocation4]  }
  0x24   :  { %s461_s30 = scalar_lea.hbm %s636_s3, 512 }
  0x25   :  { %p462_p2 = scmp.ne.s32.totalorder %s636_s3, %s461_s30  ;;  %p465_p3 = scmp.lt.u32.totalorder %s461_s30, %s636_s3 }
  0x27   :  { %p467_p4 = pnand %p465_p3, %p462_p2 }
  0x29   :  { %470 = shalt.err (!%p467_p4)
}
  0x2a   :  { %s471_s14 = scalar_lea.vmem %s46_s18, 512  ;;  %p476_p6 = scmp.lt.s32.totalorder %s46_s18, %s46_s18 }
  0x2b   :  { %p472_p5 = scmp.ne.s32.totalorder %s46_s18, %s471_s14  ;;  %p477_p7 = scmp.lt.s32.totalorder %s471_s14, %s471_s14 }
  0x2d   :  { %p478_p8 = por %p477_p7, %p476_p6 }
  0x2f   :  { %p479_p9 = pnand %p478_p8, %p472_p5 }
  0x31   :  { %482 = shalt.err (!%p479_p9)
}
  0x32   :  { %51 = dma.hbm_to_vmem [thread:$0]  %s636_s3, 512, %s46_s18, [#allocation7], %s512_s11, %s512_s11, %s513_s12  }
  0x33   :  { %505 = dma.done.wait [#allocation4], 128  }
  0x34   :  { %506 = vsyncadd [#allocation4], 4294967168 }
  0x35   :  { %507 = dma.done.wait [#allocation7], 1024  }
  0x36   :  { %508 = vsyncadd [#allocation7], 4294966272  ;;  %v516_v0 = vmov 0.0|0.0   ;;  %vm517_vm0 = vmmov 0   ;;  %v518_v1 = vmov 0.0   ;;  %v68_v2 = vld [vmem:[#allocation6] sm:$0xff]  ;;  %v241_v26 = vstv %s639_s6 }
  0x37   :  { %388 = vmatprep.subr.bf16.mxu0 %v516_v0  ;;  %369 = vmatprep.mubr.msk.f32.mxu0 %vm517_vm0, %v518_v1  ;;  %v69_v3 = vld [vmem:[#allocation6 + $0x8] sm:$0xff]  ;;  %v70_v4 = vld [vmem:[#allocation6 + $0x10] sm:$0xff]  ;;  %v71_v6 = vld [vmem:[#allocation6 + $0x18] sm:$0xff]  ;;  %vm79_vm1 = vcmask 261120   ;;  %vm324_vm2 = vcmask 57344  }
  0x38   :  { %394 = vmatprep.subr.bf16.mxu1 %v516_v0  ;;  %380 = vmatprep.mubr.msk.f32.mxu1 %vm517_vm0, %v518_v1  ;;  %v389_v5 = vpack.c.bf16 %v69_v3, %v68_v2  ;;  %v392_v7 = vpack.c.bf16 %v71_v6, %v70_v4  ;;  %v67_v8 = vld [vmem:[#allocation3] sm:$0xff]  ;;  %v154_v9 = vld [vmem:[#allocation8] sm:$0xff]  ;;  %v155_v10 = vld [vmem:[#allocation8 + $0x8] sm:$0xff] }
  0x39   :  { %v156_v11 = vld [vmem:[#allocation8 + $0x10] sm:$0xff]  ;;  %v395_v12 = vpack.c.bf16 %v155_v10, %v154_v9  ;;  %v157_v13 = vld [vmem:[#allocation8 + $0x18] sm:$0xff] }
  0x3a   :  { %390 = vmatpush3.bf16.msra.mxu0 %v389_v5  ;;  %v398_v14 = vpack.c.bf16 %v157_v13, %v156_v11  ;;  %v342_v15 = vld [vmem:[%s635_s2] ss:$0 sm:$0xff] }
  0x3b   :  { %391 = vmatprep.subr.bf16.mxu0 %v516_v0  ;;  %396 = vmatpush3.bf16.msra.mxu1 %v395_v12  ;;  %v344_v20 = vld [vmem:[%s637_s4] ss:$0 sm:$0xff]  ;;  %s519_s4 = smov [#allocation9]  }
  0x3c   :  { %397 = vmatprep.subr.bf16.mxu1 %v516_v0  ;;  %v239_v25 = vld [vmem:[%s638_s5] sm:$0x1]  ;;  %s332_s20 = sshll.u32 %s519_s4, 4  ;;  %s333_s20 = int_to_ptr.vmem [resolvable:$true] %s332_s20 }
  0x3d   :  { %s483_s5 = scalar_lea.vmem %s333_s20, 16  ;;  %s487_s21 = scalar_lea.vmem %s333_s20, 32 }
  0x3e   :  { %393 = vmatpush3.bf16.msra.mxu0 %v392_v7  ;;  %p484_p10 = scmp.ne.s32.totalorder %s333_s20, %s483_s5  ;;  %p488_p11 = scmp.lt.s32.totalorder %s333_s20, %s333_s20 }
  0x3f   :  { %383 = vmatprep.subr.mxu0 %v518_v1  ;;  %399 = vmatpush3.bf16.msra.mxu1 %v398_v14  ;;  %p489_p12 = scmp.lt.s32.totalorder %s487_s21, %s483_s5 }
  0x41   :  { %370 = vmatmul.mubr.msk.f32.vlgmr.msra.gmra.mrb[0].mxu0 %vm79_vm1, %v67_v8  ;;  %p490_p13 = por %p489_p12, %p488_p11 }
  0x42   :  { %385 = vmatprep.mubr.msk.f32.mxu0 %vm517_vm0, %v518_v1 }
  0x43   :  { %p491_p0 = pnand %p490_p13, %p484_p10 }
 0x114   :  { %v149_v16 = vpop.f32.mrb[0].mxu0 }
 0x115   :  { %v150_v17 = vadd.f32 %v342_v15, %v149_v16  ;;  %v371_v18 = vpop.f32.mrb[1].mxu0 }
 0x117   :  { %409 = vtanh.f32 %v150_v17 }
 0x121   :  { %v410_v19 = vpop.eup %409 }
 0x122   :  { %381 = vmatmul.mubr.msk.f32.vlgmr.msra.gmra.mrb[0].mxu1 %vm79_vm1, %v410_v19 }
 0x1f5   :  { %v234_v21 = vpop.f32.mrb[0].mxu1 }
 0x1f6   :  { %v235_v22 = vadd.f32 %v344_v20, %v234_v21  ;;  %v382_v23 = vpop.f32.mrb[1].mxu1 }
 0x1f8   :  { %411 = vtanh.f32 %v235_v22 }
 0x202   :  { %v412_v24 = vpop.eup %411 }
 0x203   :  { %384 = vmatpush3.xpose.msk.msra.mxu0 %vm79_vm1, %v412_v24 }
 0x206   :  { %386 = vmatmul.mubr.msk.f32.vlgmr.msra.gmra.mrb[2].mxu0 %vm79_vm1, %v239_v25 }
 0x2d9   :  { %v314_v27 = vpop.f32.mrb[2].mxu0 }
 0x2da   :  { %v315_v28 = vadd.f32 %v314_v27, %v241_v26  ;;  %v387_v29 = vpop.f32.mrb[3].mxu0 }
 0x2dc   :  { %v348_v30 = vmul.f32 -1.442695, %v315_v28 }
 0x2de   :  { %413 = vpow2.f32 %v348_v30 }
 0x2e8   :  { %v414_v31 = vpop.eup %413 }
 0x2e9   :  { %v321_v32 = vadd.f32 1.0, %v414_v31 }
 0x2eb   :  { %415 = vrcp.f32 %v321_v32 }
 0x2f5   :  { %v416_v33 = vpop.eup %415 }
 0x2f6   :  { %325 = vst.msk [vmem:[#allocation9] sm:$0x1] %vm324_vm2, %v416_v33 }
 0x2f7   :  { %494 = shalt.err (!%p491_p0)
}
 0x2f8   :  { %s495_s23 = scalar_lea.hbm %s640_s7, 16 }
 0x2f9   :  { %p496_p1 = scmp.ne.s32.totalorder %s640_s7, %s495_s23  ;;  %p499_p2 = scmp.lt.u32.totalorder %s495_s23, %s640_s7 }
 0x2fb   :  { %p501_p3 = pnand %p499_p2, %p496_p1 }
 0x2fd   :  { %504 = shalt.err (!%p501_p3)
}
 0x2fe   :  { %335 = dma.vmem_to_hbm [thread:$0]  %s333_s20, 16, %s640_s7, [#allocation5]  }
 0x2ff   :  { %509 = dma.done.wait [#allocation5], 16  }
 0x300   :  { %510 = vsyncadd [#allocation5], 4294967280 }
 0x301   :  { %339 = vsyncpa [#allocation4], 1 }
 0x302   :  { %340 = vsyncpa [#allocation7], 1 }
 0x303   :  { %341 = vsyncpa [#allocation5], 1 }

</bundles_post_ra>
